<compile_context>
chip_gen: v7x
topology: tpu7x:2x2x1
jax: 0.10.0
libtpu: 0.0.40
codegen_flags: <defaults>
</compile_context>

<pallas_src>
import functools

import jax
import jax.numpy as jnp
from jax.experimental import pallas as pl
from jax.experimental.pallas import tpu as pltpu


_TARGET_TILE_BYTES = 2 * 1024 * 1024  # ~2 MiB of state per grid step


def _round_up(x, m):
    return ((x + m - 1) // m) * m


def _critic_kernel(x_ref, w1_ref, b1_ref, w2_ref, b2_ref, out_ref):
    # x:   (tb, D) state tile in natural layout (transposed in-kernel).
    # w1:  (D, D)  PyTorch Linear weight (h = x @ w1.T  <=>  h^T = w1 @ x^T).
    # b1:  (D, 1)  first bias as a column.
    # w2:  (D, 1)  value-head weight as a column.
    # b2:  (1,)    scalar bias in SMEM.
    # out: (1, tb) lane-dense row of values.
    xt = x_ref[...].T                                                   # (D, tb)  XLU
    ht = jnp.dot(w1_ref[...], xt, preferred_element_type=jnp.float32)  # (D, tb)  MXU
    ht = jnp.maximum(ht + b1_ref[...], 0.0)                            # bias + ReLU
    # Dropout: identity at inference time (module.eval()).
    # TODO(synk): training-mode dropout would need pltpu.prng_seed/prng_random_bits.
    v = jnp.sum(ht * w2_ref[...], axis=0, keepdims=True)               # (1, tb)  VPU+XLU
    out_ref[...] = (v + b2_ref[0]).astype(out_ref.dtype)


@functools.partial(jax.jit, static_argnames=("block_rows",))
def critic_forward(state, w1, b1, w2, b2, *, block_rows=None):
    """Critic forward pass.

    state: (B, D) f32.
    w1:    (D, D) PyTorch Linear weight (h = state @ w1.T + b1).
    b1:    (D,).
    w2:    (1, D) or (D,) PyTorch Linear weight of the value head.
    b2:    (1,) or scalar.
    Returns the squeezed value head, shape (B,), f32.
    """
    B, D = state.shape

    # Batch tile on the lane axis: multiple of 128, sized so each grid step
    # moves ~2 MiB of state, capped at 8192 rows and at the rounded-up batch.
    if block_rows is None:
        tb = max(128, min(_TARGET_TILE_BYTES // (4 * D), 8192))
    else:
        tb = max(128, int(block_rows))
    tb = _round_up(tb, 128)
    tb = min(tb, _round_up(B, 128))
    # Prefer >= 2 grid steps when the batch is large enough: on v7x the
    # "parallel" batch axis then splits across both TensorCores.
    if B > 2 * 128:
        tb = min(tb, _round_up(pl.cdiv(B, 2), 128))
    nb = pl.cdiv(B, tb)

    state = state.astype(jnp.float32)
    w1 = w1.astype(jnp.float32)                      # (D, D), PyTorch layout
    b1_col = b1.reshape(D, 1).astype(jnp.float32)    # (D, 1)
    w2_col = w2.reshape(D, 1).astype(jnp.float32)    # (D, 1)
    b2_s = jnp.asarray(b2, jnp.float32).reshape(1)   # scalar -> SMEM

    cost = pl.CostEstimate(
        flops=2 * B * D * D + 3 * B * D,
        transcendentals=0,
        bytes_accessed=4 * (B * D + D * D + 2 * D + 1 + B),
    )

    out = pl.pallas_call(
        _critic_kernel,
        out_shape=jax.ShapeDtypeStruct((1, nb * tb), jnp.float32),
        grid_spec=pltpu.PrefetchScalarGridSpec(
            num_scalar_prefetch=0,
            grid=(nb,),
            in_specs=[
                pl.BlockSpec((tb, D), lambda i: (i, 0)),   # state tile (pipelined)
                pl.BlockSpec((D, D), lambda i: (0, 0)),    # W1 (resident)
                pl.BlockSpec((D, 1), lambda i: (0, 0)),    # b1 column (resident)
                pl.BlockSpec((D, 1), lambda i: (0, 0)),    # w2 column (resident)
                pl.BlockSpec(memory_space=pltpu.MemorySpace.SMEM),  # b2 scalar
            ],
            out_specs=pl.BlockSpec((1, tb), lambda i: (0, i)),      # lane-dense row
        ),
        compiler_params=pltpu.CompilerParams(
            dimension_semantics=("parallel",),
            vmem_limit_bytes=32 * 1024 * 1024,   # raise v5e's 16 MiB default
        ),
        cost_estimate=cost,
    )(state, w1, b1_col, w2_col, b2_s)

    return out[0, :B]   # .squeeze()


def _reference(state, w1, b1, w2, b2):
    h = jnp.maximum(state @ w1.T + b1, 0.0)
    return (h @ w2.reshape(1, -1).T + b2.reshape(1))[:, 0]


if __name__ == "__main__":
    D = 32  # args.rnn_dim (small, consistent with the module)
    key = jax.random.PRNGKey(0)
    k_s1, k_s2, k_w1, k_b1, k_w2, k_b2 = jax.random.split(key, 6)

    # Deterministic, PyTorch-Linear-like parameter magnitudes.
    w1 = jax.random.normal(k_w1, (D, D), dtype=jnp.float32) / jnp.sqrt(D)
    b1 = jax.random.normal(k_b1, (D,), dtype=jnp.float32) * 0.01
    w2 = jax.random.normal(k_w2, (1, D), dtype=jnp.float32) / jnp.sqrt(D)
    b2 = jax.random.normal(k_b2, (1,), dtype=jnp.float32) * 0.01

    # Case 1: small batch, single (ragged) grid step: B=20 < tb=128, no pad op.
    B1 = 20
    state1 = jax.random.normal(k_s1, (B1, D), dtype=jnp.float32)
    v1 = critic_forward(state1, w1, b1, w2, b2)
    jax.block_until_ready(v1)
    r1 = _reference(state1, w1, b1, w2, b2)
    assert v1.shape == (B1,), v1.shape
    assert jnp.allclose(v1, r1, atol=1e-5, rtol=1e-5), (v1, r1)

    # Case 2: multi-step grid with a ragged last block (B=200, tb=128 -> 2 steps).
    B2 = 200
    state2 = jax.random.normal(k_s2, (B2, D), dtype=jnp.float32)
    v2 = critic_forward(state2, w1, b1, w2, b2, block_rows=128)
    jax.block_until_ready(v2)
    r2 = _reference(state2, w1, b1, w2, b2)
    assert v2.shape == (B2,), v2.shape
    assert jnp.allclose(v2, r2, atol=1e-5, rtol=1e-5), (v2, r2)

    print("KERNEL_OK")
</pallas_src>

<mosaic_0001>
module attributes {stable_mosaic.version = 11 : i64} {
  func.func @_critic_kernel(%arg0: i32, %arg1: memref<128x32xf32, #tpu.memory_space<vmem>>, %arg2: memref<32x32xf32, #tpu.memory_space<vmem>>, %arg3: memref<32x1xf32, #tpu.memory_space<vmem>>, %arg4: memref<32x1xf32, #tpu.memory_space<vmem>>, %arg5: memref<1xf32, #tpu.memory_space<smem>>, %arg6: memref<1x128xf32, #tpu.memory_space<vmem>>) attributes {dimension_semantics = [#tpu.dimension_semantics<parallel>], iteration_bounds = array<i64: 1>, scalar_prefetch = 0 : i64, scratch_operands = 0 : i64, tpu.core_type = #tpu.core_type<tc>, window_params = [{transform_indices = @transform_0, window_bounds = array<i64: 128, 32>}, {pipeline_mode = #tpu.pipeline_mode<synchronous>, transform_indices = @transform_1, window_bounds = array<i64: 32, 32>}, {pipeline_mode = #tpu.pipeline_mode<synchronous>, transform_indices = @transform_2, window_bounds = array<i64: 32, 1>}, {pipeline_mode = #tpu.pipeline_mode<synchronous>, transform_indices = @transform_3, window_bounds = array<i64: 32, 1>}, {transform_indices = @transform_4, window_bounds = array<i64: 1>}, {transform_indices = @transform_5, window_bounds = array<i64: 1, 128>}]} {
    %c0 = arith.constant 0 : index
    %c0_0 = arith.constant 0 : index
    %0 = vector.load %arg1[%c0, %c0_0] : memref<128x32xf32, #tpu.memory_space<vmem>>, vector<128x32xf32>
    %1 = tpu.transpose %0, [1, 0] : vector<128x32xf32> -> vector<32x128xf32>
    %c0_1 = arith.constant 0 : index
    %c0_2 = arith.constant 0 : index
    %2 = vector.load %arg2[%c0_1, %c0_2] : memref<32x32xf32, #tpu.memory_space<vmem>>, vector<32x32xf32>
    %cst = arith.constant dense<0.000000e+00> : vector<32x128xf32>
    %3 = tpu.matmul %2, %1, %cst {dimension_numbers = #tpu.dot_dimension_numbers<[1], [0], [0], [1], [0, 0, 1, 1], [], []>} : vector<32x32xf32>, vector<32x128xf32>, vector<32x128xf32> -> vector<32x128xf32>
    %c0_3 = arith.constant 0 : index
    %c0_4 = arith.constant 0 : index
    %4 = vector.load %arg3[%c0_3, %c0_4] : memref<32x1xf32, #tpu.memory_space<vmem>>, vector<32x1xf32>
    %5 = vector.broadcast %4 : vector<32x1xf32> to vector<32x128xf32>
    %6 = arith.addf %3, %5 : vector<32x128xf32>
    %cst_5 = arith.constant 0.000000e+00 : f32
    %7 = vector.broadcast %cst_5 : f32 to vector<32x128xf32>
    %8 = arith.maximumf %6, %7 : vector<32x128xf32>
    %c0_6 = arith.constant 0 : index
    %c0_7 = arith.constant 0 : index
    %9 = vector.load %arg4[%c0_6, %c0_7] : memref<32x1xf32, #tpu.memory_space<vmem>>, vector<32x1xf32>
    %10 = vector.broadcast %9 : vector<32x1xf32> to vector<32x128xf32>
    %11 = arith.mulf %8, %10 : vector<32x128xf32>
    %cst_8 = arith.constant dense<0.000000e+00> : vector<128xf32>
    %12 = vector.multi_reduction <add>, %11, %cst_8 [0] : vector<32x128xf32> to vector<128xf32>
    %13 = vector.shape_cast %12 : vector<128xf32> to vector<1x128xf32>
    %c0_9 = arith.constant 0 : index
    %14 = memref.load %arg5[%c0_9] : memref<1xf32, #tpu.memory_space<smem>>
    %15 = vector.broadcast %14 : f32 to vector<1x128xf32>
    %16 = arith.addf %13, %15 : vector<1x128xf32>
    %c0_10 = arith.constant 0 : index
    %c0_11 = arith.constant 0 : index
    %17 = vector.load %arg6[%c0_10, %c0_11] : memref<1x128xf32, #tpu.memory_space<vmem>>, vector<1x128xf32>
    tpu.vector_store %arg6[%c0_10, %c0_11], %16 {strides = array<i32>} : memref<1x128xf32, #tpu.memory_space<vmem>>, vector<1x128xf32>,
    return
  }
  func.func @transform_0(%arg0: i32) -> (i32, i32) {
    %c0_i32 = arith.constant 0 : i32
    %c0_i32_0 = arith.constant 0 : i32
    return %arg0, %c0_i32 : i32, i32
  }
  func.func @transform_1(%arg0: i32) -> (i32, i32) {
    %c0_i32 = arith.constant 0 : i32
    %c0_i32_0 = arith.constant 0 : i32
    %c0_i32_1 = arith.constant 0 : i32
    return %c0_i32, %c0_i32_0 : i32, i32
  }
  func.func @transform_2(%arg0: i32) -> (i32, i32) {
    %c0_i32 = arith.constant 0 : i32
    %c0_i32_0 = arith.constant 0 : i32
    %c0_i32_1 = arith.constant 0 : i32
    return %c0_i32, %c0_i32_0 : i32, i32
  }
  func.func @transform_3(%arg0: i32) -> (i32, i32) {
    %c0_i32 = arith.constant 0 : i32
    %c0_i32_0 = arith.constant 0 : i32
    %c0_i32_1 = arith.constant 0 : i32
    return %c0_i32, %c0_i32_0 : i32, i32
  }
  func.func @transform_4(%arg0: i32) -> i32 {
    %c0_i32 = arith.constant 0 : i32
    %c0_i32_0 = arith.constant 0 : i32
    return %c0_i32 : i32
  }
  func.func @transform_5(%arg0: i32) -> (i32, i32) {
    %c0_i32 = arith.constant 0 : i32
    %c0_i32_0 = arith.constant 0 : i32
    return %c0_i32, %arg0 : i32, i32
  }
}

</mosaic_0001>

<bundles_post_ra>
// kernel: critic_forward.1
= control target key start
LH: loop header
LB: loop body
LE: loop exit
PB: predicated region body
PF: predicated region fallthrough
CT: control target
= control target key end

     0   :  { %vm65_vm0 = vcmask 261120   ;;  %v405_v3 = vmov 0   ;;  %s600_s0 = inlined_call_operand.vmem [shape: f32[20,32], index: 0, kind: input, shape index: {}]   ;;  %s601_s1 = inlined_call_operand.vmem [shape: f32[32,32], index: 1, kind: input, shape index: {}]   ;;  %s602_s2 = inlined_call_operand.vmem [shape: f32[32,1], index: 2, kind: input, shape index: {}]   ;;  %s603_s3 = inlined_call_operand.vmem [shape: f32[32,1], index: 3, kind: input, shape index: {}]   ;;  %s604_s4 = inlined_call_operand.<no memory space> [shape: f32[1], index: 4, kind: input, shape index: {}]   ;;  %s605_s5 = inlined_call_operand.vmem [shape: f32[1,128], index: 5, kind: output, shape index: {}]  }
   0x1   :  { %v21_v0 = vld [vmem:[%s600_s0] sm:$0xff]  ;;  %v22_v1 = vld [vmem:[%s600_s0 + $0x8] sm:$0xff]  ;;  %vm444_vm1 = vmpackc.low %vm65_vm0, %vm65_vm0  ;;  %403 = vset.pattern.permute.xlu0 %v405_v3  ;;  %404 = vset.pattern.permute.xlu1 %v405_v3 }
   0x2   :  { %v338_v4 = vpack.c.bf16 %v22_v1, %v21_v0  ;;  %v23_v5 = vld [vmem:[%s600_s0 + $0x10] sm:$0xff]  ;;  %v24_v6 = vld [vmem:[%s600_s0 + $0x18] sm:$0xff]  ;;  %v37_v8 = vld [vmem:[%s601_s1] sm:$0xff] }
   0x3   :  { %v344_v7 = vpack.c.bf16 %v24_v6, %v23_v5  ;;  %v25_v9 = vld [vmem:[%s600_s0 + $0x20] sm:$0xff]  ;;  %v26_v10 = vld [vmem:[%s600_s0 + $0x28] sm:$0xff]  ;;  %332 = vmatprep.mubr.msk.f32.mxu0 %vm65_vm0, %v37_v8  ;;  %v39_v11 = vld [vmem:[%s601_s1 + $0x10] sm:$0xff]  ;;  %v253_v6 = vstv %s604_s4 }
   0x4   :  { %340 = vmatprep.subr.msk.bf16.mxu0 %vm444_vm1, %v338_v4  ;;  %386 = vmatprep.subr.msk.bf16.mxu1 %vm444_vm1, %v338_v4  ;;  %v41_v12 = vld [vmem:[%s602_s2] sm:$0xff]  ;;  %v43_v13 = vld [vmem:[%s602_s2 + $0x10] sm:$0xff]  ;;  %v350_v14 = vpack.c.bf16 %v26_v10, %v25_v9  ;;  %v42_v15 = vld [vmem:[%s602_s2 + $0x8] sm:$0xff] }
   0x5   :  { %343 = vmatpush3.bf16.xpose.msk.msra.mxu0 %vm444_vm1, %v338_v4  ;;  %394 = vmatpush3.bf16.xpose.msk.msra.mxu1 %vm444_vm1, %v338_v4  ;;  %v44_v16 = vld [vmem:[%s602_s2 + $0x18] sm:$0xff]  ;;  %v27_v17 = vld [vmem:[%s600_s0 + $0x30] sm:$0xff]  ;;  %v215_v19 = vld [vmem:[%s603_s3] sm:$0xff] }
   0x6   :  { %346 = vmatprep.subr.msk.bf16.mxu0 %vm444_vm1, %v344_v7  ;;  %387 = vmatprep.subr.msk.bf16.mxu1 %vm444_vm1, %v344_v7  ;;  %v28_v18 = vld [vmem:[%s600_s0 + $0x38] sm:$0xff]  ;;  %v216_v20 = vld [vmem:[%s603_s3 + $0x8] sm:$0xff]  ;;  %v217_v22 = vld [vmem:[%s603_s3 + $0x10] sm:$0xff] }
   0x7   :  { %335 = vmatprep.mubr.msk.f32.mxu1 %vm65_vm0, %v39_v11  ;;  %47 = vperm.xlu0 %403, %v41_v12   ;;  %v356_v21 = vpack.c.bf16 %v28_v18, %v27_v17  ;;  %v218_v23 = vld [vmem:[%s603_s3 + $0x18] sm:$0xff]  ;;  %v29_v24 = vld [vmem:[%s600_s0 + $0x40] sm:$0xff]  ;;  %v30_v25 = vld [vmem:[%s600_s0 + $0x48] sm:$0xff] }
   0x8   :  { %57 = vperm.xlu1 %404, %v43_v13   ;;  %v362_v26 = vpack.c.bf16 %v30_v25, %v29_v24  ;;  %v31_v27 = vld [vmem:[%s600_s0 + $0x50] sm:$0xff]  ;;  %v32_v28 = vld [vmem:[%s600_s0 + $0x58] sm:$0xff]  ;;  %v33_v30 = vld [vmem:[%s600_s0 + $0x60] sm:$0xff] }
   0x9   :  { %v368_v29 = vpack.c.bf16 %v32_v28, %v31_v27  ;;  %v34_v31 = vld [vmem:[%s600_s0 + $0x68] sm:$0xff]  ;;  %v35_v33 = vld [vmem:[%s600_s0 + $0x70] sm:$0xff]  ;;  %v36_v34 = vld [vmem:[%s600_s0 + $0x78] sm:$0xff] }
   0xa   :  { %v374_v32 = vpack.c.bf16 %v34_v31, %v33_v30  ;;  %v380_v35 = vpack.c.bf16 %v36_v34, %v35_v33  ;;  %v38_v36 = vld [vmem:[%s601_s1 + $0x8] sm:$0xff]  ;;  %v40_v37 = vld [vmem:[%s601_s1 + $0x18] sm:$0xff] }
   0xb   :  { %52 = vperm.xlu0 %403, %v42_v15  }
   0xc   :  { %62 = vperm.xlu1 %404, %v44_v16  }
   0xd   :  { %349 = vmatpush3.bf16.xpose.msk.msra.mxu0 %vm444_vm1, %v344_v7  ;;  %395 = vmatpush3.bf16.xpose.msk.msra.mxu1 %vm444_vm1, %v344_v7 }
   0xe   :  { %352 = vmatprep.subr.msk.bf16.mxu0 %vm444_vm1, %v350_v14  ;;  %388 = vmatprep.subr.msk.bf16.mxu1 %vm444_vm1, %v350_v14 }
   0xf   :  { %221 = vperm.xlu0 %403, %v215_v19  }
  0x10   :  { %226 = vperm.xlu1 %404, %v216_v20  }
  0x13   :  { %231 = vperm.xlu0 %403, %v217_v22  }
  0x14   :  { %236 = vperm.xlu1 %404, %v218_v23  }
  0x15   :  { %355 = vmatpush3.bf16.xpose.msk.msra.mxu0 %vm444_vm1, %v350_v14  ;;  %396 = vmatpush3.bf16.xpose.msk.msra.mxu1 %vm444_vm1, %v350_v14 }
  0x16   :  { %358 = vmatprep.subr.msk.bf16.mxu0 %vm444_vm1, %v356_v21  ;;  %389 = vmatprep.subr.msk.bf16.mxu1 %vm444_vm1, %v356_v21 }
  0x1d   :  { %361 = vmatpush3.bf16.xpose.msk.msra.mxu0 %vm444_vm1, %v356_v21  ;;  %397 = vmatpush3.bf16.xpose.msk.msra.mxu1 %vm444_vm1, %v356_v21 }
  0x1e   :  { %364 = vmatprep.subr.msk.bf16.mxu0 %vm444_vm1, %v362_v26  ;;  %390 = vmatprep.subr.msk.bf16.mxu1 %vm444_vm1, %v362_v26 }
  0x25   :  { %367 = vmatpush3.bf16.xpose.msk.msra.mxu0 %vm444_vm1, %v362_v26  ;;  %398 = vmatpush3.bf16.xpose.msk.msra.mxu1 %vm444_vm1, %v362_v26 }
  0x26   :  { %370 = vmatprep.subr.msk.bf16.mxu0 %vm444_vm1, %v368_v29  ;;  %391 = vmatprep.subr.msk.bf16.mxu1 %vm444_vm1, %v368_v29 }
  0x2d   :  { %373 = vmatpush3.bf16.xpose.msk.msra.mxu0 %vm444_vm1, %v368_v29  ;;  %399 = vmatpush3.bf16.xpose.msk.msra.mxu1 %vm444_vm1, %v368_v29 }
  0x2e   :  { %376 = vmatprep.subr.msk.bf16.mxu0 %vm444_vm1, %v374_v32  ;;  %392 = vmatprep.subr.msk.bf16.mxu1 %vm444_vm1, %v374_v32 }
  0x35   :  { %379 = vmatpush3.bf16.xpose.msk.msra.mxu0 %vm444_vm1, %v374_v32  ;;  %400 = vmatpush3.bf16.xpose.msk.msra.mxu1 %vm444_vm1, %v374_v32 }
  0x36   :  { %382 = vmatprep.subr.msk.bf16.mxu0 %vm444_vm1, %v380_v35  ;;  %393 = vmatprep.subr.msk.bf16.mxu1 %vm444_vm1, %v380_v35 }
  0x3d   :  { %385 = vmatpush3.bf16.xpose.msk.msra.mxu0 %vm444_vm1, %v380_v35  ;;  %401 = vmatpush3.bf16.xpose.msk.msra.mxu1 %vm444_vm1, %v380_v35 }
  0x44   :  { %333 = vmatmul.mubr.msk.f32.vlgmr.msra.gmra.mrb[0].mxu0 %vm65_vm0, %v38_v36  ;;  %336 = vmatmul.mubr.msk.f32.vlgmr.msra.gmra.mrb[0].mxu1 %vm65_vm0, %v40_v37 }
  0x86   :  { %v48_v38 = vpop.permute.xlu0 %47 }
  0x87   :  { %v58_v39 = vpop.permute.xlu1 %57 }
  0x8a   :  { %v53_v40 = vpop.permute.xlu0 %52 }
  0x8b   :  { %v63_v41 = vpop.permute.xlu1 %62 }
  0x8e   :  { %v222_v42 = vpop.permute.xlu0 %221 }
  0x8f   :  { %v227_v51 = vpop.permute.xlu1 %226 }
  0x92   :  { %v232_v58 = vpop.permute.xlu0 %231 }
  0x93   :  { %v237_v61 = vpop.permute.xlu1 %236 }
 0x117   :  { %v334_v43 = vpop.f32.mrb[0].mxu0  ;;  %v337_v44 = vpop.f32.mrb[0].mxu1 }
 0x118   :  { %v198_v45 = vadd.f32 %v334_v43, %v53_v40  ;;  %v192_v46 = vpop.f32.mrb[1].mxu0  ;;  %v202_v47 = vpop.f32.mrb[1].mxu1  ;;  %v208_v48 = vadd.f32 %v337_v44, %v63_v41 }
 0x119   :  { %v193_v49 = vadd.f32 %v192_v46, %v48_v38  ;;  %v203_v50 = vadd.f32 %v202_v47, %v58_v39 }
 0x11a   :  { %v212_v52 = vmax.f32 %v198_v45, 0.0  ;;  %v214_v56 = vmax.f32 %v208_v48, 0.0 }
 0x11b   :  { %v211_v53 = vmax.f32 %v193_v49, 0.0  ;;  %v213_v54 = vmax.f32 %v203_v50, 0.0 }
 0x11c   :  { %v240_v55 = vmul.f32 %v227_v51, %v212_v52  ;;  %v242_v62 = vmul.f32 %v237_v61, %v214_v56 }
 0x11d   :  { %v239_v57 = vmul.f32 %v222_v42, %v211_v53  ;;  %v241_v60 = vmul.f32 %v232_v58, %v213_v54 }
 0x11f   :  { %v243_v59 = vadd.f32 %v240_v55, %v239_v57 }
 0x121   :  { %v244_v63 = vadd.f32 %v243_v59, %v241_v60 }
 0x123   :  { %v245_v0 = vadd.f32 %v244_v63, %v242_v62 }
 0x125   :  { %v246_v1 = vrot.slane %v245_v0, 4 }
 0x127   :  { %v247_v2 = vadd.f32 %v246_v1, %v245_v0 }
 0x129   :  { %v248_v3 = vrot.slane %v247_v2, 2 }
 0x12b   :  { %v249_v4 = vadd.f32 %v248_v3, %v247_v2 }
 0x12d   :  { %v250_v5 = vrot.slane %v249_v4, 1 }
 0x12f   :  { %v251_v7 = vadd.f32 %v250_v5, %v249_v4 }
 0x131   :  { %v254_v8 = vadd.f32 %v253_v6, %v251_v7 }
 0x133   :  { %255 = vst [vmem:[%s605_s5] sm:$0x1] %v254_v8 }

</bundles_post_ra>
